<compile_context>
chip_gen: v5e
topology: v5e:2x2
jax: 0.10.0
libtpu: 0.0.40
codegen_flags: <defaults>
</compile_context>

<pallas_src>
import functools

import jax
import jax.numpy as jnp
from jax import lax
from jax.experimental import pallas as pl
from jax.experimental.pallas import tpu as pltpu

HIDDEN = 64
ROW_CHUNK = 256   # in-kernel row chunk; batch tiles are multiples of this


def _round_up(n, m):
    return -(-n // m) * m


def _device_kind():
    try:
        return jax.devices()[0].device_kind.lower()
    except Exception:   # defensive: no backend yet, etc.
        return ""


_KIND = _device_kind()
# v7x exposes 2 TensorCores per chip: splitting the batch grid axis buys
# megacore sharding there; on single-TC v5e/v6e a split is pure overhead.
_MEGACORE = ("v7" in _KIND) or ("7x" in _KIND)
# v5-family EUP has no bf16 transcendentals -> keep bias-add/tanh in f32 there.
_ACT_DTYPE = jnp.float32 if "v5" in _KIND else jnp.bfloat16


def _value_kernel(x_ref, w1_ref, b1_ref, w2_ref, b2_ref, w3_ref, b3_ref, o_ref,
                  *, chunk, act_dtype):
    # Weights/biases are tiny: load once per batch tile and keep in vregs.
    w1 = w1_ref[...]                       # (D, 64)   bf16
    b1 = b1_ref[...].astype(act_dtype)     # (1, 64)
    w2 = w2_ref[...]                       # (64, 64)  bf16
    b2 = b2_ref[...].astype(act_dtype)     # (1, 64)
    w3 = w3_ref[...]                       # (1, 64)   bf16 (value head as row)
    b3 = b3_ref[0, 0]                      # scalar f32 from SMEM

    tb = o_ref.shape[1]
    n_chunks = tb // chunk

    def body(c, carry):
        rs = pl.multiple_of(c * chunk, chunk)
        xb = x_ref[pl.ds(rs, chunk), :].astype(jnp.bfloat16)
        # bf16 MXU matmuls with f32 accumulation; bias add + tanh in act_dtype
        # (bf16 -> bf16 EUP on v6e/v7x; f32 on v5e).
        h1 = jnp.tanh(
            jnp.dot(xb, w1, preferred_element_type=jnp.float32)
            .astype(act_dtype) + b1)
        h2 = jnp.tanh(
            jnp.dot(h1.astype(jnp.bfloat16), w2,
                    preferred_element_type=jnp.float32)
            .astype(act_dtype) + b2)
        # Value head as a lane-dense row: (1,64) x (chunk,64)^T -> (1, chunk).
        row = lax.dot_general(
            w3, h2.astype(jnp.bfloat16),
            dimension_numbers=(((1,), (1,)), ((), ())),
            preferred_element_type=jnp.float32)
        o_ref[:, pl.ds(rs, chunk)] = (row + b3).astype(o_ref.dtype)
        return carry

    unroll = 2 if n_chunks % 2 == 0 else 1
    lax.fori_loop(0, n_chunks, body, None, unroll=unroll)


def _choose_tile(B, block_b, megacore):
    """Batch tile: multiple of ROW_CHUNK; only split where it buys megacore."""
    tb = max(ROW_CHUNK,
             min(_round_up(block_b, ROW_CHUNK), _round_up(B, ROW_CHUNK)))
    if megacore:
        # Aim for >=4 programs (>=2 per TensorCore) so each core still gets
        # cross-step DMA/compute pipelining after the megacore split.
        while tb > ROW_CHUNK and _round_up(B, tb) // tb < 4:
            tb = _round_up(tb // 2, ROW_CHUNK)
    return tb


@functools.partial(jax.jit, static_argnames=("block_b",))
def value_forward(x, params, block_b=8192):
    """x: (B, num_inputs) float -> (B, 1) f32 state values."""
    w1, b1, w2, b2, w3, b3 = params
    B, D = x.shape

    tb = _choose_tile(B, block_b, _MEGACORE)
    B_pad = _round_up(B, tb)
    if B_pad != B:
        x = jnp.pad(x, ((0, B_pad - B), (0, 0)))

    # bf16 operands for the MXU (f32 accumulation happens in-kernel).
    # x is DMA'd in whatever dtype the caller provides (bf16 x works as-is).
    w1b = w1.astype(jnp.bfloat16)
    w2b = w2.astype(jnp.bfloat16)
    w3r = jnp.reshape(w3, (1, HIDDEN)).astype(jnp.bfloat16)
    b1f = b1.astype(jnp.float32)
    b2f = b2.astype(jnp.float32)
    b3r = jnp.reshape(b3, (1, 1)).astype(jnp.float32)

    grid = (B_pad // tb,)
    full = lambda i: (0, 0)   # weights/biases resident for every batch tile

    out = pl.pallas_call(
        functools.partial(_value_kernel, chunk=ROW_CHUNK, act_dtype=_ACT_DTYPE),
        # Lane-dense output: one row of B_pad values; reshaped to (B,1) below.
        out_shape=jax.ShapeDtypeStruct((1, B_pad), jnp.float32),
        grid_spec=pltpu.PrefetchScalarGridSpec(
            num_scalar_prefetch=0,
            grid=grid,
            in_specs=[
                pl.BlockSpec((tb, D), lambda i: (i, 0)),            # x tile
                pl.BlockSpec((D, HIDDEN), full),                    # w1 (bf16)
                pl.BlockSpec((1, HIDDEN), full),                    # b1 (f32)
                pl.BlockSpec((HIDDEN, HIDDEN), full),               # w2 (bf16)
                pl.BlockSpec((1, HIDDEN), full),                    # b2 (f32)
                pl.BlockSpec((1, HIDDEN), full),                    # w3 row
                pl.BlockSpec(memory_space=pltpu.MemorySpace.SMEM),  # b3 scalar
            ],
            out_specs=pl.BlockSpec((1, tb), lambda i: (0, i)),
        ),
        compiler_params=pltpu.CompilerParams(
            dimension_semantics=("parallel",),
            # x tile at tb=8192, D=32 is ~1 MiB f32 (2 MiB double-buffered);
            # 32 MiB leaves headroom on every generation (v7x: 64 MiB phys).
            vmem_limit_bytes=32 * 1024 * 1024,
        ),
    )(x, w1b, b1f, w2b, b2f, w3r, b3r)

    return jnp.reshape(out, (B_pad, 1))[:B]


def init_value_params(key, num_inputs):
    """nn.Linear-style init + the value_head scaling (weight*0.1, bias*0.0)."""
    k1, k2, k3, k4, k5, k6 = jax.random.split(key, 6)

    def linear_init(kw, kb, fan_in, fan_out):
        bound = 1.0 / jnp.sqrt(jnp.float32(fan_in))
        w = jax.random.uniform(kw, (fan_in, fan_out), jnp.float32, -bound, bound)
        b = jax.random.uniform(kb, (1, fan_out), jnp.float32, -bound, bound)
        return w, b

    w1, b1 = linear_init(k1, k2, num_inputs, HIDDEN)
    w2, b2 = linear_init(k3, k4, HIDDEN, HIDDEN)
    w3, b3 = linear_init(k5, k6, HIDDEN, 1)
    w3 = w3 * 0.1   # value_head.weight.data.mul_(0.1)
    b3 = b3 * 0.0   # value_head.bias.data.mul_(0.0)
    return (w1, b1, w2, b2, w3, b3)


def value_ref(x, params):
    w1, b1, w2, b2, w3, b3 = params
    h1 = jnp.tanh(x @ w1 + b1)
    h2 = jnp.tanh(h1 @ w2 + b2)
    return h2 @ w3 + b3


if __name__ == "__main__":
    num_inputs = 32
    key = jax.random.PRNGKey(0)
    kx, kp = jax.random.split(key)
    params = init_value_params(kp, num_inputs)

    # (batch, block_b): tiny single-tile, ragged batch (padding path), and a
    # multi-program case (grid >= 2; >= 4 after the megacore split on v7x).
    cases = [(8, 8192), (300, 8192), (1024, 512)]
    for batch, block_b in cases:
        x = jax.random.normal(jax.random.fold_in(kx, batch),
                              (batch, num_inputs), jnp.float32)
        out = jax.block_until_ready(value_forward(x, params, block_b=block_b))
        ref = value_ref(x, params)
        assert out.shape == (batch, 1), out.shape
        err = float(jnp.max(jnp.abs(out - ref)))
        # bf16 MXU operands (and bf16 tanh on v6e/v7x) vs an f32 reference.
        assert jnp.allclose(out, ref, atol=2e-2, rtol=2e-2), f"max err {err}"
    print("KERNEL_OK")
</pallas_src>

<mosaic_0001>
module attributes {stable_mosaic.version = 11 : i64} {
  func.func @_value_kernel(%arg0: i32, %arg1: memref<256x32xf32, #tpu.memory_space<vmem>>, %arg2: memref<32x64xbf16, #tpu.memory_space<vmem>>, %arg3: memref<1x64xf32, #tpu.memory_space<vmem>>, %arg4: memref<64x64xbf16, #tpu.memory_space<vmem>>, %arg5: memref<1x64xf32, #tpu.memory_space<vmem>>, %arg6: memref<1x64xbf16, #tpu.memory_space<vmem>>, %arg7: memref<1x1xf32, #tpu.memory_space<smem>>, %arg8: memref<1x256xf32, #tpu.memory_space<vmem>>) attributes {dimension_semantics = [#tpu.dimension_semantics<parallel>], iteration_bounds = array<i64: 1>, scalar_prefetch = 0 : i64, scratch_operands = 0 : i64, tpu.core_type = #tpu.core_type<tc>, window_params = [{transform_indices = @transform_0, window_bounds = array<i64: 256, 32>}, {pipeline_mode = #tpu.pipeline_mode<synchronous>, transform_indices = @transform_1, window_bounds = array<i64: 32, 64>}, {pipeline_mode = #tpu.pipeline_mode<synchronous>, transform_indices = @transform_2, window_bounds = array<i64: 1, 64>}, {pipeline_mode = #tpu.pipeline_mode<synchronous>, transform_indices = @transform_3, window_bounds = array<i64: 64, 64>}, {pipeline_mode = #tpu.pipeline_mode<synchronous>, transform_indices = @transform_4, window_bounds = array<i64: 1, 64>}, {pipeline_mode = #tpu.pipeline_mode<synchronous>, transform_indices = @transform_5, window_bounds = array<i64: 1, 64>}, {transform_indices = @transform_6, window_bounds = array<i64: 1, 1>}, {transform_indices = @transform_7, window_bounds = array<i64: 1, 256>}]} {
    %c0 = arith.constant 0 : index
    %c0_0 = arith.constant 0 : index
    %0 = vector.load %arg2[%c0, %c0_0] : memref<32x64xbf16, #tpu.memory_space<vmem>>, vector<32x64xbf16>
    %c0_1 = arith.constant 0 : index
    %c0_2 = arith.constant 0 : index
    %1 = vector.load %arg3[%c0_1, %c0_2] : memref<1x64xf32, #tpu.memory_space<vmem>>, vector<1x64xf32>
    %2 = arith.truncf %1 : vector<1x64xf32> to vector<1x64xbf16>
    %c0_3 = arith.constant 0 : index
    %c0_4 = arith.constant 0 : index
    %3 = vector.load %arg4[%c0_3, %c0_4] : memref<64x64xbf16, #tpu.memory_space<vmem>>, vector<64x64xbf16>
    %c0_5 = arith.constant 0 : index
    %c0_6 = arith.constant 0 : index
    %4 = vector.load %arg5[%c0_5, %c0_6] : memref<1x64xf32, #tpu.memory_space<vmem>>, vector<1x64xf32>
    %5 = arith.truncf %4 : vector<1x64xf32> to vector<1x64xbf16>
    %c0_7 = arith.constant 0 : index
    %c0_8 = arith.constant 0 : index
    %6 = vector.load %arg6[%c0_7, %c0_8] : memref<1x64xbf16, #tpu.memory_space<vmem>>, vector<1x64xbf16>
    %c0_9 = arith.constant 0 : index
    %c0_10 = arith.constant 0 : index
    %7 = memref.load %arg7[%c0_9, %c0_10] : memref<1x1xf32, #tpu.memory_space<smem>>
    %c0_i32 = arith.constant 0 : i32
    %c256_i32 = arith.constant 256 : i32
    %8 = arith.muli %c0_i32, %c256_i32 : i32
    %9 = tpu.assume_multiple %8, 256 : i32
    %10 = arith.index_cast %9 : i32 to index
    %c0_11 = arith.constant 0 : index
    %11 = vector.load %arg1[%10, %c0_11] : memref<256x32xf32, #tpu.memory_space<vmem>>, vector<256x32xf32>
    %12 = arith.truncf %11 : vector<256x32xf32> to vector<256x32xbf16>
    %cst = arith.constant dense<0.000000e+00> : vector<256x64xf32>
    %13 = tpu.matmul %12, %0, %cst {dimension_numbers = #tpu.dot_dimension_numbers<[1], [0], [0], [1], [0, 0, 1, 1], [], []>} : vector<256x32xbf16>, vector<32x64xbf16>, vector<256x64xf32> -> vector<256x64xf32>
    %14 = arith.truncf %13 : vector<256x64xf32> to vector<256x64xbf16>
    %15 = vector.broadcast %2 : vector<1x64xbf16> to vector<256x64xbf16>
    %16 = arith.addf %14, %15 : vector<256x64xbf16>
    %17 = math.tanh %16 : vector<256x64xbf16>
    %cst_12 = arith.constant dense<0.000000e+00> : vector<256x64xf32>
    %18 = tpu.matmul %17, %3, %cst_12 {dimension_numbers = #tpu.dot_dimension_numbers<[1], [0], [0], [1], [0, 0, 1, 1], [], []>} : vector<256x64xbf16>, vector<64x64xbf16>, vector<256x64xf32> -> vector<256x64xf32>
    %19 = arith.truncf %18 : vector<256x64xf32> to vector<256x64xbf16>
    %20 = vector.broadcast %5 : vector<1x64xbf16> to vector<256x64xbf16>
    %21 = arith.addf %19, %20 : vector<256x64xbf16>
    %22 = math.tanh %21 : vector<256x64xbf16>
    %cst_13 = arith.constant dense<0.000000e+00> : vector<1x256xf32>
    %23 = tpu.matmul %6, %22, %cst_13 {dimension_numbers = #tpu.dot_dimension_numbers<[1], [1], [0], [0], [0, 0, 1, 0], [], []>} : vector<1x64xbf16>, vector<256x64xbf16>, vector<1x256xf32> -> vector<1x256xf32>
    %24 = vector.broadcast %7 : f32 to vector<1x256xf32>
    %25 = arith.addf %23, %24 : vector<1x256xf32>
    %c0_14 = arith.constant 0 : index
    %26 = arith.index_cast %9 : i32 to index
    %27 = vector.load %arg8[%c0_14, %26] : memref<1x256xf32, #tpu.memory_space<vmem>>, vector<1x256xf32>
    tpu.vector_store %arg8[%c0_14, %26], %25 {strides = array<i32>} : memref<1x256xf32, #tpu.memory_space<vmem>>, vector<1x256xf32>,
    %c1_i32 = arith.constant 1 : i32
    return
  }
  func.func @transform_0(%arg0: i32) -> (i32, i32) {
    %c0_i32 = arith.constant 0 : i32
    %c0_i32_0 = arith.constant 0 : i32
    return %arg0, %c0_i32 : i32, i32
  }
  func.func @transform_1(%arg0: i32) -> (i32, i32) {
    %c0_i32 = arith.constant 0 : i32
    %c0_i32_0 = arith.constant 0 : i32
    %c0_i32_1 = arith.constant 0 : i32
    return %c0_i32, %c0_i32_0 : i32, i32
  }
  func.func @transform_2(%arg0: i32) -> (i32, i32) {
    %c0_i32 = arith.constant 0 : i32
    %c0_i32_0 = arith.constant 0 : i32
    %c0_i32_1 = arith.constant 0 : i32
    return %c0_i32, %c0_i32_0 : i32, i32
  }
  func.func @transform_3(%arg0: i32) -> (i32, i32) {
    %c0_i32 = arith.constant 0 : i32
    %c0_i32_0 = arith.constant 0 : i32
    %c0_i32_1 = arith.constant 0 : i32
    return %c0_i32, %c0_i32_0 : i32, i32
  }
  func.func @transform_4(%arg0: i32) -> (i32, i32) {
    %c0_i32 = arith.constant 0 : i32
    %c0_i32_0 = arith.constant 0 : i32
    %c0_i32_1 = arith.constant 0 : i32
    return %c0_i32, %c0_i32_0 : i32, i32
  }
  func.func @transform_5(%arg0: i32) -> (i32, i32) {
    %c0_i32 = arith.constant 0 : i32
    %c0_i32_0 = arith.constant 0 : i32
    %c0_i32_1 = arith.constant 0 : i32
    return %c0_i32, %c0_i32_0 : i32, i32
  }
  func.func @transform_6(%arg0: i32) -> (i32, i32) {
    %c0_i32 = arith.constant 0 : i32
    %c0_i32_0 = arith.constant 0 : i32
    %c0_i32_1 = arith.constant 0 : i32
    return %c0_i32, %c0_i32_0 : i32, i32
  }
  func.func @transform_7(%arg0: i32) -> (i32, i32) {
    %c0_i32 = arith.constant 0 : i32
    %c0_i32_0 = arith.constant 0 : i32
    return %c0_i32, %arg0 : i32, i32
  }
}

</mosaic_0001>

<bundles_post_ra>
// kernel: value_forward.1
= control target key start
LH: loop header
LB: loop body
LE: loop exit
PB: predicated region body
PF: predicated region fallthrough
CT: control target
= control target key end

     0   :  { %vm106_vm0 = vcmask 261120   ;;  %vm465_vm1 = vcmask 523264   ;;  %vm881_vm2 = vcmask 1040384   ;;  %s1422_s1 = inlined_call_operand.vmem [shape: bf16[32,64], index: 1, kind: input, shape index: {}]   ;;  %s1423_s0 = inlined_call_operand.vmem [shape: f32[256,32], index: 0, kind: input, shape index: {}]   ;;  %s1424_s3 = inlined_call_operand.vmem [shape: bf16[64,64], index: 3, kind: input, shape index: {}]   ;;  %s1425_s2 = inlined_call_operand.vmem [shape: f32[1,64], index: 2, kind: input, shape index: {}]   ;;  %s1426_s4 = inlined_call_operand.vmem [shape: f32[1,64], index: 4, kind: input, shape index: {}]   ;;  %s1427_s5 = inlined_call_operand.vmem [shape: bf16[1,64], index: 5, kind: input, shape index: {}]   ;;  %s1428_s6 = inlined_call_operand.<no memory space> [shape: f32[1,1], index: 6, kind: input, shape index: {}]   ;;  %s1429_s7 = inlined_call_operand.vmem [shape: f32[1,256], index: 7, kind: output, shape index: {}]  }
   0x1   :  { %v952_v0 = vld [vmem:[%s1422_s1 + $0x8] sm:$0xff]  ;;  %v951_v1 = vld [vmem:[%s1422_s1] sm:$0xff]  ;;  %v64_v4 = vld [vmem:[%s1423_s0 + $0x90] sm:$0xff] }
   0x2   :  { %v46_v2 = vld [vmem:[%s1423_s0] sm:$0xff]  ;;  %161 = vmatpush.bf16.msra.mxu0 %v952_v0  ;;  %957 = vmatpush.bf16.msra.mxu3 %v952_v0  ;;  %v47_v3 = vld [vmem:[%s1423_s0 + $0x8] sm:$0xff]  ;;  %v65_v5 = vld [vmem:[%s1423_s0 + $0x98] sm:$0xff] }
   0x3   :  { %v78_v6 = vpack.c.bf16 %v47_v3, %v46_v2  ;;  %v87_v7 = vpack.c.bf16 %v65_v5, %v64_v4  ;;  %v48_v8 = vld [vmem:[%s1423_s0 + $0x10] sm:$0xff]  ;;  %v49_v9 = vld [vmem:[%s1423_s0 + $0x18] sm:$0xff]  ;;  %v66_v10 = vld [vmem:[%s1423_s0 + $0xa0] sm:$0xff] }
   0x4   :  { %v67_v11 = vld [vmem:[%s1423_s0 + $0xa8] sm:$0xff]  ;;  %v79_v12 = vpack.c.bf16 %v49_v9, %v48_v8  ;;  %v50_v14 = vld [vmem:[%s1423_s0 + $0x20] sm:$0xff]  ;;  %v68_v16 = vld [vmem:[%s1423_s0 + $0xb0] sm:$0xff] }
   0x5   :  { %v88_v13 = vpack.c.bf16 %v67_v11, %v66_v10  ;;  %v51_v15 = vld [vmem:[%s1423_s0 + $0x28] sm:$0xff]  ;;  %v69_v17 = vld [vmem:[%s1423_s0 + $0xb8] sm:$0xff]  ;;  %v52_v20 = vld [vmem:[%s1423_s0 + $0x30] sm:$0xff] }
   0x6   :  { %162 = vmatpush.bf16.msra.mxu0 %v951_v1  ;;  %958 = vmatpush.bf16.msra.mxu3 %v951_v1  ;;  %v80_v18 = vpack.c.bf16 %v51_v15, %v50_v14  ;;  %v89_v19 = vpack.c.bf16 %v69_v17, %v68_v16  ;;  %v53_v21 = vld [vmem:[%s1423_s0 + $0x38] sm:$0xff]  ;;  %v70_v22 = vld [vmem:[%s1423_s0 + $0xc0] sm:$0xff]  ;;  %v71_v23 = vld [vmem:[%s1423_s0 + $0xc8] sm:$0xff] }
   0x7   :  { %v81_v24 = vpack.c.bf16 %v53_v21, %v52_v20  ;;  %v90_v25 = vpack.c.bf16 %v71_v23, %v70_v22  ;;  %v54_v26 = vld [vmem:[%s1423_s0 + $0x40] sm:$0xff]  ;;  %v55_v27 = vld [vmem:[%s1423_s0 + $0x48] sm:$0xff]  ;;  %v72_v28 = vld [vmem:[%s1423_s0 + $0xd0] sm:$0xff] }
   0x8   :  { %v73_v29 = vld [vmem:[%s1423_s0 + $0xd8] sm:$0xff]  ;;  %v82_v30 = vpack.c.bf16 %v55_v27, %v54_v26  ;;  %v56_v32 = vld [vmem:[%s1423_s0 + $0x50] sm:$0xff]  ;;  %v74_v34 = vld [vmem:[%s1423_s0 + $0xe0] sm:$0xff] }
   0x9   :  { %901 = vmatmul.msk.bf16.vlgmr.msra.gmra.mxu0 %vm106_vm0, %v78_v6  ;;  %910 = vmatmul.msk.bf16.vlgmr.msra.gmra.mxu3 %vm106_vm0, %v87_v7  ;;  %v91_v31 = vpack.c.bf16 %v73_v29, %v72_v28  ;;  %v57_v33 = vld [vmem:[%s1423_s0 + $0x58] sm:$0xff]  ;;  %v75_v35 = vld [vmem:[%s1423_s0 + $0xe8] sm:$0xff]  ;;  %v58_v38 = vld [vmem:[%s1423_s0 + $0x60] sm:$0xff] }
   0xa   :  { %v83_v36 = vpack.c.bf16 %v57_v33, %v56_v32  ;;  %v92_v37 = vpack.c.bf16 %v75_v35, %v74_v34  ;;  %v59_v39 = vld [vmem:[%s1423_s0 + $0x68] sm:$0xff]  ;;  %v76_v40 = vld [vmem:[%s1423_s0 + $0xf0] sm:$0xff]  ;;  %v77_v41 = vld [vmem:[%s1423_s0 + $0xf8] sm:$0xff] }
   0xb   :  { %v84_v42 = vpack.c.bf16 %v59_v39, %v58_v38  ;;  %v93_v43 = vpack.c.bf16 %v77_v41, %v76_v40  ;;  %v60_v44 = vld [vmem:[%s1423_s0 + $0x70] sm:$0xff]  ;;  %v61_v45 = vld [vmem:[%s1423_s0 + $0x78] sm:$0xff]  ;;  %v954_v49 = vld [vmem:[%s1424_s3 + $0x8] sm:$0xff] }
   0xc   :  { %v956_v46 = vld [vmem:[%s1424_s3 + $0x18] sm:$0xff]  ;;  %v85_v47 = vpack.c.bf16 %v61_v45, %v60_v44  ;;  %v955_v48 = vld [vmem:[%s1424_s3 + $0x10] sm:$0xff]  ;;  %v953_v50 = vld [vmem:[%s1424_s3] sm:$0xff] }
   0xd   :  { %518 = vmatpush.bf16.msra.mxu1 %v956_v46  ;;  %959 = vmatpush.bf16.msra.mxu2 %v956_v46  ;;  %v32_v51 = vld [vmem:[%s1425_s2] sm:$0x1]  ;;  %v63_v53 = vld [vmem:[%s1423_s0 + $0x88] sm:$0xff] }
   0xe   :  { %v62_v52 = vld [vmem:[%s1423_s0 + $0x80] sm:$0xff]  ;;  %v33_v54 = vpack.c.bf16 %v32_v51, %v32_v51 }
   0xf   :  { %v86_v55 = vpack.c.bf16 %v63_v53, %v62_v52 }
  0x10   :  { %v277_v57 = vpack.i.b16 %v33_v54, %v33_v54 }
  0x11   :  { %519 = vmatpush.bf16.msra.mxu1 %v955_v48  ;;  %960 = vmatpush.bf16.msra.mxu2 %v955_v48 }
  0x12   :  { %v279_v59 = vperm.slane %v277_v57, 0 }
  0x14   :  { %v1264_v63 = vunpack.c.l.bf16 %v279_v59 }
  0x15   :  { %520 = vmatpush.bf16.msra.mxu1 %v954_v49  ;;  %961 = vmatpush.bf16.msra.mxu2 %v954_v49 }
  0x19   :  { %902 = vmatmul.msk.bf16.gmra.mxu0 %vm106_vm0, %v79_v12  ;;  %911 = vmatmul.msk.bf16.gmra.mxu3 %vm106_vm0, %v88_v13 }
  0x1a   :  { %521 = vmatpush.bf16.msra.mxu1 %v953_v50  ;;  %962 = vmatpush.bf16.msra.mxu2 %v953_v50 }
  0x29   :  { %903 = vmatmul.msk.bf16.gmra.mxu0 %vm106_vm0, %v80_v18  ;;  %912 = vmatmul.msk.bf16.gmra.mxu3 %vm106_vm0, %v89_v19 }
  0x39   :  { %904 = vmatmul.msk.bf16.gmra.mxu0 %vm106_vm0, %v81_v24  ;;  %913 = vmatmul.msk.bf16.gmra.mxu3 %vm106_vm0, %v90_v25 }
  0x49   :  { %905 = vmatmul.msk.bf16.gmra.mxu0 %vm106_vm0, %v82_v30  ;;  %914 = vmatmul.msk.bf16.gmra.mxu3 %vm106_vm0, %v91_v31 }
  0x59   :  { %906 = vmatmul.msk.bf16.gmra.mxu0 %vm106_vm0, %v83_v36  ;;  %915 = vmatmul.msk.bf16.gmra.mxu3 %vm106_vm0, %v92_v37 }
  0x69   :  { %907 = vmatmul.msk.bf16.gmra.mxu0 %vm106_vm0, %v84_v42  ;;  %916 = vmatmul.msk.bf16.gmra.mxu3 %vm106_vm0, %v93_v43 }
  0x79   :  { %908 = vmatmul.msk.bf16.gmra.mxu0 %vm106_vm0, %v85_v47 }
  0x86   :  { %v164_v56 = vpop.f32.mrf.mxu0 }
  0x87   :  { %v244_v58 = vpack.c.bf16 %v164_v56, %v164_v56 }
  0x89   :  { %909 = vmatmul.msk.bf16.gmra.mxu0 %vm106_vm0, %v86_v55  ;;  %v280_v62 = vunpack.c.l.bf16 %v244_v58 }
  0x8b   :  { %v313_v3 = vadd.f32 %v1264_v63, %v280_v62 }
  0x8c   :  { %v209_v60 = vpop.f32.mrf.mxu3 }
  0x8d   :  { %v262_v1 = vpack.c.bf16 %v209_v60, %v209_v60 }
  0x8e   :  { %v166_v61 = vpop.f32.mrf.mxu0 }
  0x8f   :  { %v245_v0 = vpack.c.bf16 %v166_v61, %v166_v61  ;;  %v298_v6 = vunpack.c.l.bf16 %v262_v1 }
  0x91   :  { %v281_v2 = vunpack.c.l.bf16 %v245_v0  ;;  %v331_v13 = vadd.f32 %v1264_v63, %v298_v6 }
  0x93   :  { %v314_v4 = vadd.f32 %v1264_v63, %v281_v2 }
  0x94   :  { %v211_v5 = vpop.f32.mrf.mxu3 }
  0x95   :  { %v345_v7 = vpack.c.bf16 %v314_v4, %v313_v3  ;;  %v263_v8 = vpack.c.bf16 %v211_v5, %v211_v5 }
  0x96   :  { %v169_v9 = vpop.f32.mrf.mxu0 }
  0x97   :  { %v361_v10 = vunpack.c.l.bf16 %v345_v7  ;;  %v362_v11 = vunpack.c.h.bf16 %v345_v7  ;;  %v299_v12 = vunpack.c.l.bf16 %v263_v8  ;;  %v246_v16 = vpack.c.bf16 %v169_v9, %v169_v9 }
  0x99   :  { %963 = vtanh.f32 %v361_v10  ;;  %v332_v14 = vadd.f32 %v1264_v63, %v299_v12  ;;  %v282_v20 = vunpack.c.l.bf16 %v246_v16 }
  0x9a   :  { %965 = vtanh.f32 %v362_v11 }
  0x9b   :  { %v1270_v15 = vpack.c.bf16 %v332_v14, %v331_v13  ;;  %v315_v26 = vadd.f32 %v1264_v63, %v282_v20 }
  0x9c   :  { %v214_v17 = vpop.f32.mrf.mxu3 }
  0x9d   :  { %v264_v23 = vpack.c.bf16 %v214_v17, %v214_v17 }
  0x9e   :  { %v171_v18 = vpop.f32.mrf.mxu0 }
  0x9f   :  { %v964_v19 = vpop.eup %963  ;;  %v247_v21 = vpack.c.bf16 %v171_v18, %v171_v18  ;;  %v300_v29 = vunpack.c.l.bf16 %v264_v23 }
  0xa0   :  { %v966_v22 = vpop.eup %965 }
  0xa1   :  { %v283_v24 = vunpack.c.l.bf16 %v247_v21  ;;  %v425_v25 = vpack.c.bf16 %v966_v22, %v964_v19  ;;  %v333_v36 = vadd.f32 %v1264_v63, %v300_v29 }
  0xa3   :  { %v316_v27 = vadd.f32 %v1264_v63, %v283_v24  ;;  %933 = vmatmul.msk.bf16.vlgmr.msra.gmra.mxu1 %vm465_vm1, %v425_v25 }
  0xa4   :  { %v216_v28 = vpop.f32.mrf.mxu3 }
  0xa5   :  { %v346_v30 = vpack.c.bf16 %v316_v27, %v315_v26  ;;  %v265_v31 = vpack.c.bf16 %v216_v28, %v216_v28 }
  0xa6   :  { %v174_v32 = vpop.f32.mrf.mxu0 }
  0xa7   :  { %v363_v33 = vunpack.c.l.bf16 %v346_v30  ;;  %v364_v34 = vunpack.c.h.bf16 %v346_v30  ;;  %v301_v35 = vunpack.c.l.bf16 %v265_v31  ;;  %v248_v39 = vpack.c.bf16 %v174_v32, %v174_v32 }
  0xa9   :  { %967 = vtanh.f32 %v363_v33  ;;  %v334_v37 = vadd.f32 %v1264_v63, %v301_v35  ;;  %v284_v45 = vunpack.c.l.bf16 %v248_v39 }
  0xaa   :  { %969 = vtanh.f32 %v364_v34 }
  0xab   :  { %v355_v38 = vpack.c.bf16 %v334_v37, %v333_v36  ;;  %v317_v51 = vadd.f32 %v1264_v63, %v284_v45 }
  0xac   :  { %v219_v40 = vpop.f32.mrf.mxu3 }
  0xad   :  { %v381_v41 = vunpack.c.l.bf16 %v355_v38  ;;  %v382_v42 = vunpack.c.h.bf16 %v355_v38  ;;  %v266_v48 = vpack.c.bf16 %v219_v40, %v219_v40 }
  0xae   :  { %v176_v43 = vpop.f32.mrf.mxu0 }
  0xaf   :  { %v968_v44 = vpop.eup %967  ;;  %971 = vtanh.f32 %v381_v41  ;;  %v249_v46 = vpack.c.bf16 %v176_v43, %v176_v43  ;;  %v302_v55 = vunpack.c.l.bf16 %v266_v48 }
  0xb0   :  { %v970_v47 = vpop.eup %969  ;;  %973 = vtanh.f32 %v382_v42 }
  0xb1   :  { %v285_v49 = vunpack.c.l.bf16 %v249_v46  ;;  %v426_v50 = vpack.c.bf16 %v970_v47, %v968_v44  ;;  %v335_v1 = vadd.f32 %v1264_v63, %v302_v55 }
  0xb3   :  { %v318_v52 = vadd.f32 %v1264_v63, %v285_v49  ;;  %934 = vmatmul.msk.bf16.gmra.mxu1 %vm465_vm1, %v426_v50 }
  0xb4   :  { %v221_v53 = vpop.f32.mrf.mxu3 }
  0xb5   :  { %v972_v54 = vpop.eup %971  ;;  %v347_v56 = vpack.c.bf16 %v318_v52, %v317_v51  ;;  %v267_v57 = vpack.c.bf16 %v221_v53, %v221_v53 }
  0xb6   :  { %v974_v58 = vpop.eup %973  ;;  %v179_v59 = vpop.f32.mrf.mxu0 }
  0xb7   :  { %v365_v60 = vunpack.c.l.bf16 %v347_v56  ;;  %v366_v61 = vunpack.c.h.bf16 %v347_v56  ;;  %v303_v62 = vunpack.c.l.bf16 %v267_v57  ;;  %v435_v0 = vpack.c.bf16 %v974_v58, %v972_v54 }
  0xb8   :  { %v250_v4 = vpack.c.bf16 %v179_v59, %v179_v59 }
  0xb9   :  { %975 = vtanh.f32 %v365_v60  ;;  %v336_v2 = vadd.f32 %v1264_v63, %v303_v62  ;;  %943 = vmatmul.msk.bf16.vlgmr.msra.gmra.mxu2 %vm465_vm1, %v435_v0 }
  0xba   :  { %977 = vtanh.f32 %v366_v61  ;;  %v286_v10 = vunpack.c.l.bf16 %v250_v4 }
  0xbb   :  { %v356_v3 = vpack.c.bf16 %v336_v2, %v335_v1 }
  0xbc   :  { %v224_v5 = vpop.f32.mrf.mxu3  ;;  %v319_v17 = vadd.f32 %v1264_v63, %v286_v10 }
  0xbd   :  { %v383_v6 = vunpack.c.l.bf16 %v356_v3  ;;  %v384_v7 = vunpack.c.h.bf16 %v356_v3  ;;  %v268_v13 = vpack.c.bf16 %v224_v5, %v224_v5 }
  0xbe   :  { %v181_v8 = vpop.f32.mrf.mxu0 }
  0xbf   :  { %v976_v9 = vpop.eup %975  ;;  %979 = vtanh.f32 %v383_v6  ;;  %v251_v11 = vpack.c.bf16 %v181_v8, %v181_v8  ;;  %v304_v21 = vunpack.c.l.bf16 %v268_v13 }
  0xc0   :  { %v978_v12 = vpop.eup %977  ;;  %981 = vtanh.f32 %v384_v7 }
  0xc1   :  { %v287_v14 = vunpack.c.l.bf16 %v251_v11  ;;  %v427_v16 = vpack.c.bf16 %v978_v12, %v976_v9  ;;  %v337_v30 = vadd.f32 %v1264_v63, %v304_v21 }
  0xc3   :  { %v320_v18 = vadd.f32 %v1264_v63, %v287_v14  ;;  %935 = vmatmul.msk.bf16.gmra.mxu1 %vm465_vm1, %v427_v16 }
  0xc4   :  { %v226_v19 = vpop.f32.mrf.mxu3 }
  0xc5   :  { %v980_v20 = vpop.eup %979  ;;  %v348_v22 = vpack.c.bf16 %v320_v18, %v319_v17  ;;  %v269_v23 = vpack.c.bf16 %v226_v19, %v226_v19 }
  0xc6   :  { %v982_v24 = vpop.eup %981  ;;  %v184_v25 = vpop.f32.mrf.mxu0 }
  0xc7   :  { %v367_v26 = vunpack.c.l.bf16 %v348_v22  ;;  %v368_v27 = vunpack.c.h.bf16 %v348_v22  ;;  %v305_v28 = vunpack.c.l.bf16 %v269_v23  ;;  %v436_v29 = vpack.c.bf16 %v982_v24, %v980_v20 }
  0xc8   :  { %v252_v33 = vpack.c.bf16 %v184_v25, %v184_v25 }
  0xc9   :  { %983 = vtanh.f32 %v367_v26  ;;  %v338_v31 = vadd.f32 %v1264_v63, %v305_v28  ;;  %944 = vmatmul.msk.bf16.gmra.mxu2 %vm465_vm1, %v436_v29 }
  0xca   :  { %985 = vtanh.f32 %v368_v27  ;;  %v288_v39 = vunpack.c.l.bf16 %v252_v33 }
  0xcb   :  { %v357_v32 = vpack.c.bf16 %v338_v31, %v337_v30 }
  0xcc   :  { %v229_v34 = vpop.f32.mrf.mxu3  ;;  %v321_v45 = vadd.f32 %v1264_v63, %v288_v39 }
  0xcd   :  { %v385_v35 = vunpack.c.l.bf16 %v357_v32  ;;  %v386_v36 = vunpack.c.h.bf16 %v357_v32  ;;  %v270_v42 = vpack.c.bf16 %v229_v34, %v229_v34 }
  0xce   :  { %v186_v37 = vpop.f32.mrf.mxu0 }
  0xcf   :  { %v984_v38 = vpop.eup %983  ;;  %987 = vtanh.f32 %v385_v35  ;;  %v253_v40 = vpack.c.bf16 %v186_v37, %v186_v37  ;;  %v306_v49 = vunpack.c.l.bf16 %v270_v42 }
  0xd0   :  { %v986_v41 = vpop.eup %985  ;;  %989 = vtanh.f32 %v386_v36 }
  0xd1   :  { %v289_v43 = vunpack.c.l.bf16 %v253_v40  ;;  %v428_v44 = vpack.c.bf16 %v986_v41, %v984_v38  ;;  %v339_v58 = vadd.f32 %v1264_v63, %v306_v49 }
  0xd3   :  { %v322_v46 = vadd.f32 %v1264_v63, %v289_v43  ;;  %936 = vmatmul.msk.bf16.gmra.mxu1 %vm465_vm1, %v428_v44 }
  0xd4   :  { %v231_v47 = vpop.f32.mrf.mxu3 }
  0xd5   :  { %v988_v48 = vpop.eup %987  ;;  %v349_v50 = vpack.c.bf16 %v322_v46, %v321_v45  ;;  %v271_v51 = vpack.c.bf16 %v231_v47, %v231_v47 }
  0xd6   :  { %v990_v52 = vpop.eup %989  ;;  %v189_v53 = vpop.f32.mrf.mxu0 }
  0xd7   :  { %v369_v54 = vunpack.c.l.bf16 %v349_v50  ;;  %v370_v55 = vunpack.c.h.bf16 %v349_v50  ;;  %v307_v56 = vunpack.c.l.bf16 %v271_v51  ;;  %v437_v57 = vpack.c.bf16 %v990_v52, %v988_v48 }
  0xd8   :  { %v254_v61 = vpack.c.bf16 %v189_v53, %v189_v53 }
  0xd9   :  { %991 = vtanh.f32 %v369_v54  ;;  %v340_v59 = vadd.f32 %v1264_v63, %v307_v56  ;;  %945 = vmatmul.msk.bf16.gmra.mxu2 %vm465_vm1, %v437_v57 }
  0xda   :  { %993 = vtanh.f32 %v370_v55  ;;  %v290_v4 = vunpack.c.l.bf16 %v254_v61 }
  0xdb   :  { %v358_v60 = vpack.c.bf16 %v340_v59, %v339_v58 }
  0xdc   :  { %v234_v62 = vpop.f32.mrf.mxu3  ;;  %v323_v10 = vadd.f32 %v1264_v63, %v290_v4 }
  0xdd   :  { %v387_v0 = vunpack.c.l.bf16 %v358_v60  ;;  %v388_v1 = vunpack.c.h.bf16 %v358_v60  ;;  %v272_v7 = vpack.c.bf16 %v234_v62, %v234_v62 }
  0xde   :  { %v191_v2 = vpop.f32.mrf.mxu0 }
  0xdf   :  { %v992_v3 = vpop.eup %991  ;;  %995 = vtanh.f32 %v387_v0  ;;  %v255_v5 = vpack.c.bf16 %v191_v2, %v191_v2  ;;  %v308_v14 = vunpack.c.l.bf16 %v272_v7 }
  0xe0   :  { %v994_v6 = vpop.eup %993  ;;  %997 = vtanh.f32 %v388_v1 }
  0xe1   :  { %v291_v8 = vunpack.c.l.bf16 %v255_v5  ;;  %v429_v9 = vpack.c.bf16 %v994_v6, %v992_v3  ;;  %v341_v24 = vadd.f32 %v1264_v63, %v308_v14 }
  0xe3   :  { %v324_v11 = vadd.f32 %v1264_v63, %v291_v8  ;;  %937 = vmatmul.msk.bf16.gmra.mxu1 %vm465_vm1, %v429_v9 }
  0xe4   :  { %v236_v12 = vpop.f32.mrf.mxu3 }
  0xe5   :  { %v996_v13 = vpop.eup %995  ;;  %v350_v16 = vpack.c.bf16 %v324_v11, %v323_v10  ;;  %v273_v17 = vpack.c.bf16 %v236_v12, %v236_v12 }
  0xe6   :  { %v998_v18 = vpop.eup %997  ;;  %v194_v19 = vpop.f32.mrf.mxu0 }
  0xe7   :  { %v371_v20 = vunpack.c.l.bf16 %v350_v16  ;;  %v372_v21 = vunpack.c.h.bf16 %v350_v16  ;;  %v309_v22 = vunpack.c.l.bf16 %v273_v17  ;;  %v438_v23 = vpack.c.bf16 %v998_v18, %v996_v13 }
  0xe8   :  { %v256_v27 = vpack.c.bf16 %v194_v19, %v194_v19 }
  0xe9   :  { %999 = vtanh.f32 %v371_v20  ;;  %v342_v25 = vadd.f32 %v1264_v63, %v309_v22  ;;  %946 = vmatmul.msk.bf16.gmra.mxu2 %vm465_vm1, %v438_v23 }
  0xea   :  { %1001 = vtanh.f32 %v372_v21  ;;  %v292_v33 = vunpack.c.l.bf16 %v256_v27 }
  0xeb   :  { %v359_v26 = vpack.c.bf16 %v342_v25, %v341_v24  ;;  %v42_v25 = vld [vmem:[%s1426_s4] sm:$0x1] }
  0xec   :  { %v239_v28 = vpop.f32.mrf.mxu3  ;;  %v325_v39 = vadd.f32 %v1264_v63, %v292_v33 }
  0xed   :  { %v389_v29 = vunpack.c.l.bf16 %v359_v26  ;;  %v390_v30 = vunpack.c.h.bf16 %v359_v26  ;;  %v274_v36 = vpack.c.bf16 %v239_v28, %v239_v28  ;;  %v43_v26 = vpack.c.bf16 %v42_v25, %v42_v25 }
  0xee   :  { %v196_v31 = vpop.f32.mrf.mxu0 }
  0xef   :  { %v1000_v32 = vpop.eup %999  ;;  %1003 = vtanh.f32 %v389_v29  ;;  %v257_v34 = vpack.c.bf16 %v196_v31, %v196_v31  ;;  %v310_v43 = vunpack.c.l.bf16 %v274_v36 }
  0xf0   :  { %v1002_v35 = vpop.eup %1001  ;;  %1005 = vtanh.f32 %v390_v30  ;;  %v636_v30 = vpack.i.b16 %v43_v26, %v43_v26 }
  0xf1   :  { %v293_v37 = vunpack.c.l.bf16 %v257_v34  ;;  %v430_v38 = vpack.c.bf16 %v1002_v35, %v1000_v32  ;;  %v343_v52 = vadd.f32 %v1264_v63, %v310_v43  ;;  %v379_v32 = vunpack.c.l.bf16 %v1270_v15 }
  0xf2   :  { %v638_v34 = vperm.slane %v636_v30, 0 }
  0xf3   :  { %v326_v40 = vadd.f32 %v1264_v63, %v293_v37  ;;  %938 = vmatmul.msk.bf16.gmra.mxu1 %vm465_vm1, %v430_v38 }
  0xf4   :  { %v241_v41 = vpop.f32.mrf.mxu3  ;;  %v1320_v37 = vunpack.c.l.bf16 %v638_v34 }
  0xf5   :  { %v1004_v42 = vpop.eup %1003  ;;  %v351_v44 = vpack.c.bf16 %v326_v40, %v325_v39  ;;  %v275_v45 = vpack.c.bf16 %v241_v41, %v241_v41 }
  0xf6   :  { %v1006_v46 = vpop.eup %1005  ;;  %v199_v47 = vpop.f32.mrf.mxu0 }
  0xf7   :  { %v373_v48 = vunpack.c.l.bf16 %v351_v44  ;;  %v374_v49 = vunpack.c.h.bf16 %v351_v44  ;;  %v311_v50 = vunpack.c.l.bf16 %v275_v45  ;;  %v439_v51 = vpack.c.bf16 %v1006_v46, %v1004_v42 }
  0xf8   :  { %v258_v55 = vpack.c.bf16 %v199_v47, %v199_v47 }
  0xf9   :  { %1007 = vtanh.f32 %v373_v48  ;;  %v344_v53 = vadd.f32 %v1264_v63, %v311_v50  ;;  %947 = vmatmul.msk.bf16.gmra.mxu2 %vm465_vm1, %v439_v51 }
  0xfa   :  { %1009 = vtanh.f32 %v374_v49  ;;  %v294_v60 = vunpack.c.l.bf16 %v258_v55 }
  0xfb   :  { %v360_v54 = vpack.c.bf16 %v344_v53, %v343_v52 }
  0xfc   :  { %v327_v2 = vadd.f32 %v1264_v63, %v294_v60 }
  0xfd   :  { %v391_v56 = vunpack.c.l.bf16 %v360_v54  ;;  %v392_v57 = vunpack.c.h.bf16 %v360_v54 }
  0xfe   :  { %v201_v58 = vpop.f32.mrf.mxu0 }
  0xff   :  { %v1008_v59 = vpop.eup %1007  ;;  %1011 = vtanh.f32 %v391_v56  ;;  %v259_v61 = vpack.c.bf16 %v201_v58, %v201_v58 }
 0x100   :  { %v1010_v62 = vpop.eup %1009  ;;  %1013 = vtanh.f32 %v392_v57 }
 0x101   :  { %v295_v0 = vunpack.c.l.bf16 %v259_v61  ;;  %v431_v1 = vpack.c.bf16 %v1010_v62, %v1008_v59 }
 0x103   :  { %v328_v3 = vadd.f32 %v1264_v63, %v295_v0  ;;  %939 = vmatmul.msk.bf16.gmra.mxu1 %vm465_vm1, %v431_v1 }
 0x105   :  { %v1012_v4 = vpop.eup %1011  ;;  %v352_v5 = vpack.c.bf16 %v328_v3, %v327_v2 }
 0x106   :  { %v1014_v6 = vpop.eup %1013  ;;  %v204_v7 = vpop.f32.mrf.mxu0 }
 0x107   :  { %v375_v8 = vunpack.c.l.bf16 %v352_v5  ;;  %v376_v9 = vunpack.c.h.bf16 %v352_v5  ;;  %v440_v10 = vpack.c.bf16 %v1014_v6, %v1012_v4  ;;  %v260_v11 = vpack.c.bf16 %v204_v7, %v204_v7 }
 0x109   :  { %1015 = vtanh.f32 %v375_v8  ;;  %948 = vmatmul.msk.bf16.gmra.mxu2 %vm465_vm1, %v440_v10  ;;  %v296_v12 = vunpack.c.l.bf16 %v260_v11 }
 0x10a   :  { %1017 = vtanh.f32 %v376_v9 }
 0x10b   :  { %v329_v18 = vadd.f32 %v1264_v63, %v296_v12 }
 0x10e   :  { %v206_v13 = vpop.f32.mrf.mxu0 }
 0x10f   :  { %v1016_v14 = vpop.eup %1015  ;;  %v261_v16 = vpack.c.bf16 %v206_v13, %v206_v13 }
 0x110   :  { %v1018_v17 = vpop.eup %1017 }
 0x111   :  { %v297_v19 = vunpack.c.l.bf16 %v261_v16  ;;  %v432_v20 = vpack.c.bf16 %v1018_v17, %v1016_v14 }
 0x113   :  { %v330_v21 = vadd.f32 %v1264_v63, %v297_v19  ;;  %940 = vmatmul.msk.bf16.gmra.mxu1 %vm465_vm1, %v432_v20  ;;  %v380_v63 = vunpack.c.h.bf16 %v1270_v15 }
 0x115   :  { %v353_v22 = vpack.c.bf16 %v330_v21, %v329_v18 }
 0x117   :  { %v377_v23 = vunpack.c.l.bf16 %v353_v22  ;;  %v378_v24 = vunpack.c.h.bf16 %v353_v22 }
 0x119   :  { %1019 = vtanh.f32 %v377_v23 }
 0x11a   :  { %1021 = vtanh.f32 %v378_v24 }
 0x11b   :  { %1023 = vtanh.f32 %v379_v32 }
 0x11c   :  { %1025 = vtanh.f32 %v380_v63 }
 0x11f   :  { %v1020_v27 = vpop.eup %1019 }
 0x120   :  { %v1022_v28 = vpop.eup %1021  ;;  %v523_v29 = vpop.f32.mrf.mxu1 }
 0x121   :  { %v433_v31 = vpack.c.bf16 %v1022_v28, %v1020_v27  ;;  %v603_v33 = vpack.c.bf16 %v523_v29, %v523_v29  ;;  %v1024_v40 = vpop.eup %1023 }
 0x122   :  { %v1026_v43 = vpop.eup %1025 }
 0x123   :  { %941 = vmatmul.msk.bf16.gmra.mxu1 %vm465_vm1, %v433_v31  ;;  %v639_v36 = vunpack.c.l.bf16 %v603_v33  ;;  %v434_v15 = vpack.c.bf16 %v1026_v43, %v1024_v40 }
 0x125   :  { %v672_v41 = vadd.f32 %v1320_v37, %v639_v36 }
 0x128   :  { %v525_v35 = vpop.f32.mrf.mxu1 }
 0x129   :  { %v604_v38 = vpack.c.bf16 %v525_v35, %v525_v35 }
 0x12b   :  { %v640_v39 = vunpack.c.l.bf16 %v604_v38 }
 0x12d   :  { %v673_v42 = vadd.f32 %v1320_v37, %v640_v39 }
 0x12f   :  { %v1324_v44 = vpack.c.bf16 %v673_v42, %v672_v41 }
 0x130   :  { %v528_v45 = vpop.f32.mrf.mxu1 }
 0x131   :  { %v605_v46 = vpack.c.bf16 %v528_v45, %v528_v45 }
 0x133   :  { %942 = vmatmul.msk.bf16.gmra.mxu1 %vm465_vm1, %v434_v15  ;;  %v641_v48 = vunpack.c.l.bf16 %v605_v46 }
 0x135   :  { %v674_v51 = vadd.f32 %v1320_v37, %v641_v48 }
 0x138   :  { %v530_v47 = vpop.f32.mrf.mxu1 }
 0x139   :  { %v606_v49 = vpack.c.bf16 %v530_v47, %v530_v47 }
 0x13b   :  { %v642_v50 = vunpack.c.l.bf16 %v606_v49 }
 0x13c   :  { %v573_v53 = vpop.f32.mrf.mxu2 }
 0x13d   :  { %v675_v52 = vadd.f32 %v1320_v37, %v642_v50  ;;  %v623_v56 = vpack.c.bf16 %v573_v53, %v573_v53 }
 0x13f   :  { %v1329_v54 = vpack.c.bf16 %v675_v52, %v674_v51  ;;  %v659_v59 = vunpack.c.l.bf16 %v623_v56 }
 0x140   :  { %v533_v55 = vpop.f32.mrf.mxu1 }
 0x141   :  { %v607_v57 = vpack.c.bf16 %v533_v55, %v533_v55  ;;  %v692_v2 = vadd.f32 %v1320_v37, %v659_v59 }
 0x143   :  { %v643_v0 = vunpack.c.l.bf16 %v607_v57 }
 0x144   :  { %v575_v58 = vpop.f32.mrf.mxu2 }
 0x145   :  { %v624_v60 = vpack.c.bf16 %v575_v58, %v575_v58  ;;  %v676_v6 = vadd.f32 %v1320_v37, %v643_v0 }
 0x147   :  { %v660_v61 = vunpack.c.l.bf16 %v624_v60 }
 0x148   :  { %v535_v62 = vpop.f32.mrf.mxu1 }
 0x149   :  { %v608_v1 = vpack.c.bf16 %v535_v62, %v535_v62  ;;  %v693_v3 = vadd.f32 %v1320_v37, %v660_v61 }
 0x14b   :  { %v644_v4 = vunpack.c.l.bf16 %v608_v1  ;;  %v1333_v5 = vpack.c.bf16 %v693_v3, %v692_v2 }
 0x14c   :  { %v578_v8 = vpop.f32.mrf.mxu2 }
 0x14d   :  { %v677_v7 = vadd.f32 %v1320_v37, %v644_v4  ;;  %v625_v11 = vpack.c.bf16 %v578_v8, %v578_v8 }
 0x14f   :  { %v1337_v9 = vpack.c.bf16 %v677_v7, %v676_v6  ;;  %v661_v14 = vunpack.c.l.bf16 %v625_v11 }
 0x150   :  { %v538_v10 = vpop.f32.mrf.mxu1 }
 0x151   :  { %v609_v12 = vpack.c.bf16 %v538_v10, %v538_v10  ;;  %v694_v21 = vadd.f32 %v1320_v37, %v661_v14 }
 0x153   :  { %v645_v19 = vunpack.c.l.bf16 %v609_v12 }
 0x154   :  { %v580_v13 = vpop.f32.mrf.mxu2 }
 0x155   :  { %v626_v16 = vpack.c.bf16 %v580_v13, %v580_v13  ;;  %v678_v25 = vadd.f32 %v1320_v37, %v645_v19 }
 0x157   :  { %v662_v17 = vunpack.c.l.bf16 %v626_v16 }
 0x158   :  { %v540_v18 = vpop.f32.mrf.mxu1 }
 0x159   :  { %v610_v20 = vpack.c.bf16 %v540_v18, %v540_v18  ;;  %v695_v22 = vadd.f32 %v1320_v37, %v662_v17 }
 0x15b   :  { %v646_v23 = vunpack.c.l.bf16 %v610_v20  ;;  %v1341_v24 = vpack.c.bf16 %v695_v22, %v694_v21 }
 0x15c   :  { %v583_v27 = vpop.f32.mrf.mxu2 }
 0x15d   :  { %v679_v26 = vadd.f32 %v1320_v37, %v646_v23  ;;  %v627_v30 = vpack.c.bf16 %v583_v27, %v583_v27 }
 0x15f   :  { %v1345_v28 = vpack.c.bf16 %v679_v26, %v678_v25  ;;  %v663_v63 = vunpack.c.l.bf16 %v627_v30 }
 0x160   :  { %v543_v29 = vpop.f32.mrf.mxu1 }
 0x161   :  { %v611_v31 = vpack.c.bf16 %v543_v29, %v543_v29  ;;  %v696_v39 = vadd.f32 %v1320_v37, %v663_v63 }
 0x163   :  { %v647_v36 = vunpack.c.l.bf16 %v611_v31 }
 0x164   :  { %v585_v32 = vpop.f32.mrf.mxu2 }
 0x165   :  { %v628_v33 = vpack.c.bf16 %v585_v32, %v585_v32  ;;  %v680_v43 = vadd.f32 %v1320_v37, %v647_v36 }
 0x167   :  { %v664_v34 = vunpack.c.l.bf16 %v628_v33 }
 0x168   :  { %v545_v35 = vpop.f32.mrf.mxu1 }
 0x169   :  { %v612_v38 = vpack.c.bf16 %v545_v35, %v545_v35  ;;  %v697_v40 = vadd.f32 %v1320_v37, %v664_v34 }
 0x16b   :  { %v648_v41 = vunpack.c.l.bf16 %v612_v38  ;;  %v1349_v42 = vpack.c.bf16 %v697_v40, %v696_v39 }
 0x16c   :  { %v588_v15 = vpop.f32.mrf.mxu2 }
 0x16d   :  { %v681_v45 = vadd.f32 %v1320_v37, %v648_v41  ;;  %v629_v17 = vpack.c.bf16 %v588_v15, %v588_v15 }
 0x16f   :  { %v1353_v46 = vpack.c.bf16 %v681_v45, %v680_v43  ;;  %v665_v32 = vunpack.c.l.bf16 %v629_v17 }
 0x170   :  { %v548_v47 = vpop.f32.mrf.mxu1 }
 0x171   :  { %v613_v25 = vpack.c.bf16 %v548_v47, %v548_v47  ;;  %v698_v47 = vadd.f32 %v1320_v37, %v665_v32 }
 0x173   :  { %v649_v39 = vunpack.c.l.bf16 %v613_v25 }
 0x174   :  { %v590_v48 = vpop.f32.mrf.mxu2 }
 0x175   :  { %v630_v8 = vpack.c.bf16 %v590_v48, %v590_v48 }
 0x177   :  { %v666_v26 = vunpack.c.l.bf16 %v630_v8 }
 0x178   :  { %v550_v49 = vpop.f32.mrf.mxu1 }
 0x179   :  { %v614_v21 = vpack.c.bf16 %v550_v49, %v550_v49  ;;  %v699_v40 = vadd.f32 %v1320_v37, %v666_v26 }
 0x17b   :  { %v650_v35 = vunpack.c.l.bf16 %v614_v21  ;;  %v729_v21 = vunpack.c.h.bf16 %v1353_v46 }
 0x17c   :  { %v593_v50 = vpop.f32.mrf.mxu2 }
 0x17d   :  { %v631_v57 = vpack.c.bf16 %v593_v50, %v593_v50  ;;  %v683_v48 = vadd.f32 %v1320_v37, %v650_v35  ;;  %v717_v50 = vpack.c.bf16 %v699_v40, %v698_v47  ;;  %v727_v35 = vunpack.c.h.bf16 %v1345_v28 }
 0x17f   :  { %v667_v62 = vunpack.c.l.bf16 %v631_v57 }
 0x180   :  { %v553_v51 = vpop.f32.mrf.mxu1 }
 0x181   :  { %v615_v0 = vpack.c.bf16 %v553_v51, %v553_v51  ;;  %v700_v10 = vadd.f32 %v1320_v37, %v667_v62  ;;  %v747_v62 = vunpack.c.h.bf16 %v717_v50 }
 0x183   :  { %v651_v13 = vunpack.c.l.bf16 %v615_v0 }
 0x184   :  { %v595_v52 = vpop.f32.mrf.mxu2 }
 0x185   :  { %v632_v56 = vpack.c.bf16 %v595_v52, %v595_v52  ;;  %v684_v29 = vadd.f32 %v1320_v37, %v651_v13  ;;  %v682_v52 = vadd.f32 %v1320_v37, %v649_v39 }
 0x187   :  { %v668_v59 = vunpack.c.l.bf16 %v632_v56  ;;  %v709_v56 = vpack.c.bf16 %v683_v48, %v682_v52  ;;  %v741_v48 = vunpack.c.h.bf16 %v1333_v5 }
 0x188   :  { %v555_v53 = vpop.f32.mrf.mxu1 }
 0x189   :  { %v616_v61 = vpack.c.bf16 %v555_v53, %v555_v53  ;;  %v701_v3 = vadd.f32 %v1320_v37, %v668_v59 }
 0x18b   :  { %v652_v7 = vunpack.c.l.bf16 %v616_v61  ;;  %v718_v18 = vpack.c.bf16 %v701_v3, %v700_v10  ;;  %v730_v3 = vunpack.c.l.bf16 %v709_v56 }
 0x18c   :  { %v598_v55 = vpop.f32.mrf.mxu2 }
 0x18d   :  { %v633_v60 = vpack.c.bf16 %v598_v55, %v598_v55  ;;  %v685_v22 = vadd.f32 %v1320_v37, %v652_v7  ;;  %v748_v63 = vunpack.c.l.bf16 %v718_v18  ;;  %v749_v43 = vunpack.c.h.bf16 %v718_v18 }
 0x18f   :  { %v669_v4 = vunpack.c.l.bf16 %v633_v60  ;;  %v710_v36 = vpack.c.bf16 %v685_v22, %v684_v29  ;;  %v743_v29 = vunpack.c.h.bf16 %v1341_v24 }
 0x190   :  { %v558_v58 = vpop.f32.mrf.mxu1 }
 0x191   :  { %v617_v1 = vpack.c.bf16 %v558_v58, %v558_v58  ;;  %v702_v19 = vadd.f32 %v1320_v37, %v669_v4  ;;  %v732_v49 = vunpack.c.l.bf16 %v710_v36  ;;  %v733_v51 = vunpack.c.h.bf16 %v710_v36 }
 0x192   :  { %v746_v58 = vunpack.c.l.bf16 %v717_v50 }
 0x193   :  { %v653_v14 = vunpack.c.l.bf16 %v617_v1 }
 0x194   :  { %v600_v2 = vpop.f32.mrf.mxu2 }
 0x195   :  { %v634_v6 = vpack.c.bf16 %v600_v2, %v600_v2  ;;  %v686_v30 = vadd.f32 %v1320_v37, %v653_v14  ;;  %v745_v14 = vunpack.c.h.bf16 %v1349_v42 }
 0x197   :  { %v670_v11 = vunpack.c.l.bf16 %v634_v6  ;;  %v731_v6 = vunpack.c.h.bf16 %v709_v56 }
 0x198   :  { %v560_v12 = vpop.f32.mrf.mxu1 }
 0x199   :  { %v618_v16 = vpack.c.bf16 %v560_v12, %v560_v12  ;;  %v703_v20 = vadd.f32 %v1320_v37, %v670_v11  ;;  %v744_v12 = vunpack.c.l.bf16 %v1349_v42  ;;  %v742_v42 = vunpack.c.l.bf16 %v1341_v24 }
 0x19b   :  { %v654_v23 = vunpack.c.l.bf16 %v618_v16  ;;  %v719_v27 = vpack.c.bf16 %v703_v20, %v702_v19  ;;  %v728_v20 = vunpack.c.l.bf16 %v1353_v46 }
 0x19d   :  { %v687_v31 = vadd.f32 %v1320_v37, %v654_v23  ;;  %v750_v33 = vunpack.c.l.bf16 %v719_v27  ;;  %v751_v34 = vunpack.c.h.bf16 %v719_v27 }
 0x19f   :  { %v711_v38 = vpack.c.bf16 %v687_v31, %v686_v30  ;;  %1027 = vtanh.f32 %v750_v33 }
 0x1a0   :  { %v1364_v41 = vpop.f32.mrf.mxu1  ;;  %1029 = vtanh.f32 %v751_v34  ;;  %v726_v34 = vunpack.c.l.bf16 %v1345_v28 }
 0x1a1   :  { %v734_v45 = vunpack.c.l.bf16 %v711_v38  ;;  %v735_v15 = vunpack.c.h.bf16 %v711_v38  ;;  %1031 = vtanh.f32 %v748_v63 }
 0x1a3   :  { %1033 = vtanh.f32 %v734_v45  ;;  %v740_v45 = vunpack.c.l.bf16 %v1333_v5 }
 0x1a4   :  { %1035 = vtanh.f32 %v735_v15  ;;  %v619_v15 = vpack.c.bf16 %v1364_v41, %v1364_v41  ;;  %v725_v41 = vunpack.c.h.bf16 %v1337_v9 }
 0x1a5   :  { %1037 = vtanh.f32 %v749_v43  ;;  %v1028_v53 = vpop.eup %1027 }
 0x1a6   :  { %v1030_v55 = vpop.eup %1029  ;;  %1039 = vtanh.f32 %v732_v49  ;;  %v655_v56 = vunpack.c.l.bf16 %v619_v15 }
 0x1a7   :  { %v1032_v57 = vpop.eup %1031  ;;  %1041 = vtanh.f32 %v733_v51  ;;  %v799_v60 = vpack.c.bf16 %v1030_v55, %v1028_v53  ;;  %v724_v55 = vunpack.c.l.bf16 %v1337_v9 }
 0x1a8   :  { %v1369_v59 = vpop.f32.mrf.mxu1  ;;  %1043 = vtanh.f32 %v746_v58 }
 0x1a9   :  { %v1034_v61 = vpop.eup %1033  ;;  %v850_v1 = vsel %vm465_vm1, %v799_v60, 0  ;;  %1045 = vtanh.f32 %v747_v62  ;;  %v620_v47 = vpack.c.bf16 %v1369_v59, %v1369_v59  ;;  %v688_v62 = vadd.f32 %v1320_v37, %v655_v56 }
 0x1aa   :  { %v1036_v0 = vpop.eup %1035  ;;  %865 = vmatpush.bf16.xpose.msrb.mxu3 %v850_v1  ;;  %1047 = vtanh.f32 %v730_v3 }
 0x1ab   :  { %v1038_v2 = vpop.eup %1037  ;;  %v791_v4 = vpack.c.bf16 %v1036_v0, %v1034_v61  ;;  %1049 = vtanh.f32 %v731_v6 }
 0x1ac   :  { %v1040_v7 = vpop.eup %1039  ;;  %v798_v11 = vpack.c.bf16 %v1038_v2, %v1032_v57  ;;  %1051 = vtanh.f32 %v744_v12  ;;  %v656_v57 = vunpack.c.l.bf16 %v620_v47 }
 0x1ad   :  { %v826_v8 = vsel %vm465_vm1, %v791_v4, 0  ;;  %v1042_v10 = vpop.eup %1041  ;;  %1053 = vtanh.f32 %v745_v14 }
 0x1ae   :  { %852 = vmatpush.bf16.xpose.msrb.mxu2 %v826_v8  ;;  %v790_v16 = vpack.c.bf16 %v1042_v10, %v1040_v7  ;;  %v1044_v17 = vpop.eup %1043  ;;  %v847_v18 = vsel %vm465_vm1, %v798_v11, 0  ;;  %1055 = vtanh.f32 %v728_v20  ;;  %v689_v0 = vadd.f32 %v1320_v37, %v656_v57 }
 0x1af   :  { %v1046_v19 = vpop.eup %1045  ;;  %1057 = vtanh.f32 %v729_v21  ;;  %v722_v7 = vunpack.c.l.bf16 %v1329_v54  ;;  %v723_v8 = vunpack.c.h.bf16 %v1329_v54  ;;  %v720_v54 = vunpack.c.l.bf16 %v1324_v44 }
 0x1b0   :  { %v568_v13 = vpop.f32.mrf.mxu1  ;;  %v1048_v22 = vpop.eup %1047  ;;  %v823_v23 = vsel %vm465_vm1, %v790_v16, 0  ;;  %v797_v26 = vpack.c.bf16 %v1046_v19, %v1044_v17  ;;  %1059 = vtanh.f32 %v742_v42  ;;  %v712_v10 = vpack.c.bf16 %v689_v0, %v688_v62 }
 0x1b1   :  { %v1050_v25 = vpop.eup %1049  ;;  %v621_v63 = vpack.c.bf16 %v568_v13, %v568_v13  ;;  %1061 = vtanh.f32 %v743_v29  ;;  %v721_v21 = vunpack.c.h.bf16 %v1324_v44 }
 0x1b2   :  { %866 = vmatpush.bf16.xpose.msrb.mxu3 %v847_v18  ;;  %v789_v31 = vpack.c.bf16 %v1050_v25, %v1048_v22  ;;  %v1052_v32 = vpop.eup %1051  ;;  %v844_v46 = vsel %vm465_vm1, %v797_v26, 0  ;;  %1063 = vtanh.f32 %v726_v34  ;;  %v736_v14 = vunpack.c.l.bf16 %v712_v10 }
 0x1b3   :  { %v1054_v33 = vpop.eup %1053  ;;  %v657_v24 = vunpack.c.l.bf16 %v621_v63  ;;  %1065 = vtanh.f32 %v727_v35  ;;  %v737_v16 = vunpack.c.h.bf16 %v712_v10  ;;  %v44_v35 = vld [vmem:[%s1427_s5] sm:$0x1] }
 0x1b4   :  { %v1056_v38 = vpop.eup %1055  ;;  %v820_v39 = vsel %vm465_vm1, %v789_v31, 0  ;;  %v796_v43 = vpack.c.bf16 %v1054_v33, %v1052_v32  ;;  %1067 = vtanh.f32 %v740_v45 }
 0x1b5   :  { %v1058_v40 = vpop.eup %1057  ;;  %v690_v51 = vadd.f32 %v1320_v37, %v657_v24  ;;  %1069 = vtanh.f32 %v741_v48 }
 0x1b6   :  { %853 = vmatpush.bf16.xpose.msrb.mxu2 %v823_v23  ;;  %v788_v49 = vpack.c.bf16 %v1058_v40, %v1056_v38  ;;  %v1060_v50 = vpop.eup %1059  ;;  %v841_v52 = vsel %vm465_vm1, %v796_v43, 0  ;;  %1071 = vtanh.f32 %v724_v55 }
 0x1b7   :  { %v1062_v53 = vpop.eup %1061  ;;  %1073 = vtanh.f32 %v725_v41 }
 0x1b8   :  { %v570_v27 = vpop.f32.mrf.mxu1  ;;  %v1064_v59 = vpop.eup %1063  ;;  %v817_v5 = vsel %vm465_vm1, %v788_v49, 0  ;;  %v795_v61 = vpack.c.bf16 %v1062_v53, %v1060_v50 }
 0x1b9   :  { %v622_v30 = vpack.c.bf16 %v570_v27, %v570_v27  ;;  %v1066_v60 = vpop.eup %1065 }
 0x1ba   :  { %867 = vmatpush.bf16.xpose.msrb.mxu3 %v844_v46  ;;  %v1068_v2 = vpop.eup %1067  ;;  %v787_v9 = vpack.c.bf16 %v1066_v60, %v1064_v59  ;;  %v838_v4 = vsel %vm465_vm1, %v795_v61, 0 }
 0x1bb   :  { %v658_v36 = vunpack.c.l.bf16 %v622_v30  ;;  %v1070_v6 = vpop.eup %1069 }
 0x1bc   :  { %v1072_v11 = vpop.eup %1071  ;;  %v814_v12 = vsel %vm465_vm1, %v787_v9, 0 }
 0x1bd   :  { %v691_v28 = vadd.f32 %v1320_v37, %v658_v36  ;;  %v1074_v13 = vpop.eup %1073  ;;  %v794_v37 = vpack.c.bf16 %v1070_v6, %v1068_v2  ;;  %v800_v36 = vstv %s1428_s6 }
 0x1be   :  { %854 = vmatpush.bf16.xpose.msrb.mxu2 %v820_v39  ;;  %v786_v17 = vpack.c.bf16 %v1074_v13, %v1072_v11  ;;  %v884_v39 = vlaneseq }
 0x1bf   :  { %v713_v58 = vpack.c.bf16 %v691_v28, %v690_v51  ;;  %v835_v19 = vsel %vm465_vm1, %v794_v37, 0 }
 0x1c0   :  { %v811_v23 = vsel %vm465_vm1, %v786_v17, 0  ;;  %vm886_vm3 = vcmp.lt.s32.totalorder %v884_v39, 256 }
 0x1c1   :  { %v738_v1 = vunpack.c.l.bf16 %v713_v58  ;;  %v739_v3 = vunpack.c.h.bf16 %v713_v58 }
 0x1c2   :  { %868 = vmatpush.bf16.xpose.msrb.mxu3 %v841_v52 }
 0x1c3   :  { %1075 = vtanh.f32 %v738_v1 }
 0x1c4   :  { %1077 = vtanh.f32 %v739_v3 }
 0x1c5   :  { %1079 = vtanh.f32 %v722_v7 }
 0x1c6   :  { %855 = vmatpush.bf16.xpose.msrb.mxu2 %v817_v5  ;;  %1081 = vtanh.f32 %v723_v8 }
 0x1c7   :  { %1083 = vtanh.f32 %v736_v14 }
 0x1c8   :  { %1085 = vtanh.f32 %v737_v16 }
 0x1c9   :  { %v1076_v18 = vpop.eup %1075  ;;  %1087 = vtanh.f32 %v720_v54 }
 0x1ca   :  { %869 = vmatpush.bf16.xpose.msrb.mxu3 %v838_v4  ;;  %v1078_v20 = vpop.eup %1077  ;;  %1089 = vtanh.f32 %v721_v21 }
 0x1cb   :  { %v1080_v22 = vpop.eup %1079  ;;  %v793_v26 = vpack.c.bf16 %v1078_v20, %v1076_v18 }
 0x1cc   :  { %v1082_v25 = vpop.eup %1081 }
 0x1cd   :  { %v785_v42 = vpack.c.bf16 %v1082_v25, %v1080_v22  ;;  %v1084_v27 = vpop.eup %1083  ;;  %v832_v29 = vsel %vm465_vm1, %v793_v26, 0 }
 0x1ce   :  { %856 = vmatpush.bf16.xpose.msrb.mxu2 %v814_v12  ;;  %v1086_v30 = vpop.eup %1085 }
 0x1cf   :  { %v1088_v31 = vpop.eup %1087  ;;  %v808_v32 = vsel %vm465_vm1, %v785_v42, 0  ;;  %v792_v63 = vpack.c.bf16 %v1086_v30, %v1084_v27 }
 0x1d0   :  { %v1090_v44 = vpop.eup %1089 }
 0x1d1   :  { %v784_v46 = vpack.c.bf16 %v1090_v44, %v1088_v31  ;;  %v829_v33 = vsel %vm465_vm1, %v792_v63, 0 }
 0x1d2   :  { %870 = vmatpush.bf16.xpose.msrb.mxu3 %v835_v19 }
 0x1d3   :  { %v805_v34 = vsel %vm465_vm1, %v784_v46, 0 }
 0x1d6   :  { %857 = vmatpush.bf16.xpose.msrb.mxu2 %v811_v23 }
 0x1da   :  { %871 = vmatpush.bf16.xpose.msrb.mxu3 %v832_v29 }
 0x1de   :  { %858 = vmatpush.bf16.xpose.msrb.mxu2 %v808_v32 }
 0x1e2   :  { %872 = vmatpush.bf16.xpose.msrb.mxu3 %v829_v33 }
 0x1e6   :  { %859 = vmatpush.bf16.xpose.msrb.mxu2 %v805_v34 }
 0x1e9   :  { %950 = vmatmul.msk.bf16.vlgmr.msrb.gmra.mxu3 %vm465_vm1, %v44_v35 }
 0x1ed   :  { %949 = vmatmul.msk.bf16.vlgmr.msrb.gmra.mxu2 %vm465_vm1, %v44_v35 }
 0x26c   :  { %v874_v38 = vpop.f32.mrf.mxu3 }
 0x26d   :  { %v875_v40 = vadd.f32 %v874_v38, %v800_v36 }
 0x26f   :  { %v880_v43 = vrot.slane %v875_v40, 7 }
 0x270   :  { %v861_v24 = vpop.f32.mrf.mxu2 }
 0x271   :  { %v862_v45 = vadd.f32 %v861_v24, %v800_v36 }
 0x273   :  { %v882_v15 = vsel %vm881_vm2, %v862_v45, %v880_v43 }
 0x274   :  { %888 = vst.msk [vmem:[%s1429_s7] sm:$0x3] %vm886_vm3, %v882_v15  ;;  %v876_v47 = vpop.f32.mrf.mxu3 }
 0x278   :  { %v863_v28 = vpop.f32.mrf.mxu2 }

</bundles_post_ra>
